<compile_context>
chip_gen: v7x
topology: tpu7x:2x2x1
jax: 0.10.0
libtpu: 0.0.40
codegen_flags: <defaults>
</compile_context>

<pallas_src>
import functools

import jax
import jax.numpy as jnp
from jax import lax
from jax.experimental import pallas as pl
from jax.experimental.pallas import tpu as pltpu


# ----------------------------------------------------------------------------
# Tiling helper
# ----------------------------------------------------------------------------
def _choose_tile_pix(hw, n_streams, c_in, itemsize,
                     target_block_bytes=2 << 20, max_tile=4096):
    """Pixel tile: multiple of 128 (or the full H*W extent), sized so the
    streamed input blocks of one grid step total ~target_block_bytes; capped so
    double-buffered tiles stay far under VMEM on v5e/v6e/v7x."""
    per_lane = max(1, n_streams * c_in * itemsize)
    tile = (target_block_bytes // per_lane) // 128 * 128
    tile = int(max(128, min(tile, max_tile)))
    if tile >= hw:
        return hw  # full-extent block: legal regardless of 128-divisibility
    return tile


# ----------------------------------------------------------------------------
# Conv1x1 head: Dropout(0.5) [eval-mode identity] + Conv2d(C_in, C_out, 1, bias=False)
# ----------------------------------------------------------------------------
def _conv1x1_kernel(x_ref, w_ref, o_ref):
    # x_ref: (C_in, TILE_PIX)  channels on sublanes, pixels on lanes
    # w_ref: (C_out, C_in)     tiny, resident across the whole grid
    # o_ref: (C_out, TILE_PIX) lane-dense output (already NCHW order)
    o_ref[...] = jnp.dot(
        w_ref[...], x_ref[...], preferred_element_type=jnp.float32
    ).astype(o_ref.dtype)


@functools.partial(jax.jit, static_argnames=("tile_pix",))
def conv1x1_forward(x_nchw, weight, tile_pix=None):
    """x_nchw: (N, C_in, H, W); weight: (C_out, C_in, 1, 1) -> (N, C_out, H, W)."""
    n, c_in, h, w = x_nchw.shape
    c_out = weight.shape[0]
    hw = h * w
    itemsize = jnp.dtype(x_nchw.dtype).itemsize

    # Free views — no HBM data movement.
    x_pix = x_nchw.reshape(n, c_in, hw)
    w_mat = weight.reshape(c_out, c_in)

    if tile_pix is None:
        tile_pix = _choose_tile_pix(hw, 1, c_in, itemsize)

    grid = (n, pl.cdiv(hw, tile_pix))

    vmem_needed = 2 * (c_in + c_out) * tile_pix * itemsize + 2 * c_in * c_out * 4
    vmem_limit = int(min(max(vmem_needed + (4 << 20), 16 << 20), 32 << 20))

    out_pix = pl.pallas_call(
        _conv1x1_kernel,
        out_shape=jax.ShapeDtypeStruct((n, c_out, hw), x_nchw.dtype),
        grid_spec=pltpu.PrefetchScalarGridSpec(
            num_scalar_prefetch=0,
            grid=grid,
            in_specs=[
                pl.BlockSpec((None, c_in, tile_pix), lambda b, p: (b, 0, p)),
                pl.BlockSpec((c_out, c_in), lambda b, p: (0, 0)),  # resident
            ],
            out_specs=pl.BlockSpec((None, c_out, tile_pix), lambda b, p: (b, 0, p)),
        ),
        compiler_params=pltpu.CompilerParams(
            dimension_semantics=("parallel", "parallel"),
            vmem_limit_bytes=vmem_limit,
        ),
    )(x_pix, w_mat)

    return out_pix.reshape(n, c_out, h, w)


# ----------------------------------------------------------------------------
# Fused per-layer LPIPS distance:
#   mean( Conv1x1( (normalize(x) - normalize(y))**2 ) )
# One HBM read of each feature map, one scalar out.
# ----------------------------------------------------------------------------
def _lpips_layer_kernel(x_ref, y_ref, w_ref, o_ref, *, hw, eps):
    # x_ref, y_ref: (C, TILE_PIX);  w_ref: (1, C);  o_ref: (1, 1) resident accumulator
    b = pl.program_id(0)
    p = pl.program_id(1)

    @pl.when((b == 0) & (p == 0))
    def _():
        o_ref[...] = jnp.zeros_like(o_ref)

    x = x_ref[...].astype(jnp.float32)
    y = y_ref[...].astype(jnp.float32)

    # Per-pixel L2 normalize over channels (sublanes).
    nx = x * lax.rsqrt(jnp.sum(x * x, axis=0, keepdims=True) + eps)
    ny = y * lax.rsqrt(jnp.sum(y * y, axis=0, keepdims=True) + eps)
    d = (nx - ny) ** 2

    # 1x1-conv channel mix (C_out == 1): (1, C) @ (C, TILE_PIX) -> (1, TILE_PIX)
    wd = jnp.dot(w_ref[...], d, preferred_element_type=jnp.float32)

    # Mask out-of-range pixels of the ragged tail tile (where selects, so any
    # garbage/NaN in the padded region is dropped).
    tile_pix = d.shape[-1]
    pix = lax.broadcasted_iota(jnp.int32, (1, tile_pix), 1) + p * tile_pix
    wd = jnp.where(pix < hw, wd, 0.0)

    o_ref[...] = o_ref[...] + jnp.sum(wd)


@functools.partial(jax.jit, static_argnames=("eps", "tile_pix"))
def lpips_layer_distance(x_fmap, y_fmap, weight, eps=1e-10, tile_pix=None):
    """x_fmap, y_fmap: (N, C, H, W); weight: (1, C, 1, 1) -> scalar f32."""
    n, c_in, h, w = x_fmap.shape
    hw = h * w
    itemsize = jnp.dtype(x_fmap.dtype).itemsize

    x_pix = x_fmap.reshape(n, c_in, hw)
    y_pix = y_fmap.reshape(n, c_in, hw)
    w_mat = weight.reshape(weight.shape[0], c_in)  # (1, C)

    if tile_pix is None:
        tile_pix = _choose_tile_pix(hw, 2, c_in, itemsize)

    grid = (n, pl.cdiv(hw, tile_pix))

    # Two double-buffered input streams + resident weight + (1,1) accumulator.
    vmem_needed = 2 * 2 * c_in * tile_pix * itemsize + c_in * 4 + 4096
    vmem_limit = int(min(max(vmem_needed + (4 << 20), 16 << 20), 32 << 20))

    total = pl.pallas_call(
        functools.partial(_lpips_layer_kernel, hw=hw, eps=eps),
        out_shape=jax.ShapeDtypeStruct((1, 1), jnp.float32),
        grid_spec=pltpu.PrefetchScalarGridSpec(
            num_scalar_prefetch=0,
            grid=grid,
            in_specs=[
                pl.BlockSpec((None, c_in, tile_pix), lambda b, p: (b, 0, p)),
                pl.BlockSpec((None, c_in, tile_pix), lambda b, p: (b, 0, p)),
                pl.BlockSpec((w_mat.shape[0], c_in), lambda b, p: (0, 0)),
            ],
            out_specs=pl.BlockSpec((1, 1), lambda b, p: (0, 0)),  # resident scalar acc
        ),
        compiler_params=pltpu.CompilerParams(
            dimension_semantics=("arbitrary", "arbitrary"),
            vmem_limit_bytes=vmem_limit,
        ),
    )(x_pix, y_pix, w_mat)

    # mean over N * C_out(=1) * H * W elements
    return total[0, 0] / jnp.float32(n * hw)


# ----------------------------------------------------------------------------
# LPIPS forward given feature maps (AlexNet extractor not available in-script).
# ----------------------------------------------------------------------------
IMAGE_MU = jnp.array([-0.03, -0.088, -0.188], jnp.float32).reshape(1, 3, 1, 1)
IMAGE_SIGMA = jnp.array([0.458, 0.448, 0.45], jnp.float32).reshape(1, 3, 1, 1)


def preprocess_image(x):
    """(x - mu) / sigma, as in LPIPS.forward before the AlexNet features."""
    return (x - IMAGE_MU) / IMAGE_SIGMA


def lpips_from_fmaps(x_fmaps, y_fmaps, weights):
    """sum_l mean(Conv1x1_l((normalize(x_l) - normalize(y_l))**2)), fused per layer."""
    val = jnp.float32(0.0)
    for xf, yf, w_ in zip(x_fmaps, y_fmaps, weights):
        val = val + lpips_layer_distance(xf, yf, w_)
    return val


if __name__ == "__main__":
    key = jax.random.PRNGKey(0)
    kx, kw, k1, k2, k3, k4 = jax.random.split(key, 6)

    # --- Conv1x1 head (eval-mode dropout == identity), full-extent tile path ---
    N, C_IN, C_OUT, H, W = 2, 4, 1, 16, 16
    x = jax.random.normal(kx, (N, C_IN, H, W), dtype=jnp.float32)
    weight = jax.random.normal(kw, (C_OUT, C_IN, 1, 1), dtype=jnp.float32) * 0.1

    out = conv1x1_forward(x, weight)
    jax.block_until_ready(out)
    ref = jnp.einsum("nchw,oc->nohw", x, weight.reshape(C_OUT, C_IN))
    assert out.shape == (N, C_OUT, H, W)
    assert jnp.allclose(out, ref, atol=1e-5, rtol=1e-5)

    # --- Conv1x1 tiled + ragged pixel path (tile_pix=128, H*W=576) ---
    x2 = jax.random.normal(k1, (1, 8, 24, 24), dtype=jnp.float32)
    w2 = jax.random.normal(k2, (1, 8, 1, 1), dtype=jnp.float32) * 0.1
    out2 = conv1x1_forward(x2, w2, tile_pix=128)
    jax.block_until_ready(out2)
    ref2 = jnp.einsum("nchw,oc->nohw", x2, w2.reshape(1, 8))
    assert jnp.allclose(out2, ref2, atol=1e-5, rtol=1e-5)

    # --- Fused per-layer LPIPS distance (forced ragged tiling) ---
    y2 = jax.random.normal(k4, x2.shape, dtype=jnp.float32)

    def _layer_ref(a, b, w_):
        na = a * lax.rsqrt(jnp.sum(a * a, axis=1, keepdims=True) + 1e-10)
        nb = b * lax.rsqrt(jnp.sum(b * b, axis=1, keepdims=True) + 1e-10)
        d = (na - nb) ** 2
        return jnp.mean(jnp.einsum("nchw,oc->nohw", d, w_.reshape(w_.shape[0], -1)))

    layer_val = lpips_layer_distance(x2, y2, w2, tile_pix=128)
    jax.block_until_ready(layer_val)
    assert jnp.allclose(layer_val, _layer_ref(x2, y2, w2), atol=1e-5, rtol=1e-5)

    # --- Full LPIPS distance over two layers of (stand-in) feature maps ---
    x_fmaps = [x, x2]
    y_fmaps = [jax.random.normal(k3, x.shape, dtype=jnp.float32), y2]
    ws = [weight, w2]
    lp = lpips_from_fmaps(x_fmaps, y_fmaps, ws)
    jax.block_until_ready(lp)

    lp_ref = jnp.float32(0.0)
    for a, b, w_ in zip(x_fmaps, y_fmaps, ws):
        lp_ref = lp_ref + _layer_ref(a, b, w_)
    assert jnp.allclose(lp, lp_ref, atol=1e-5, rtol=1e-5)

    print("KERNEL_OK")
</pallas_src>

<mosaic_0001>
module attributes {stable_mosaic.version = 11 : i64} {
  func.func @_conv1x1_kernel(%arg0: i32, %arg1: i32, %arg2: memref<1x4x256xf32, #tpu.memory_space<vmem>>, %arg3: memref<1x4xf32, #tpu.memory_space<vmem>>, %arg4: memref<1x1x256xf32, #tpu.memory_space<vmem>>) attributes {dimension_semantics = [#tpu.dimension_semantics<parallel>, #tpu.dimension_semantics<parallel>], iteration_bounds = array<i64: 2, 1>, scalar_prefetch = 0 : i64, scratch_operands = 0 : i64, tpu.core_type = #tpu.core_type<tc>, window_params = [{transform_indices = @transform_0, window_bounds = array<i64: 1, 4, 256>}, {pipeline_mode = #tpu.pipeline_mode<synchronous>, transform_indices = @transform_1, window_bounds = array<i64: 1, 4>}, {transform_indices = @transform_2, window_bounds = array<i64: 1, 1, 256>}]} {
    %c0 = arith.constant 0 : index
    %c0_0 = arith.constant 0 : index
    %0 = vector.load %arg3[%c0, %c0_0] : memref<1x4xf32, #tpu.memory_space<vmem>>, vector<1x4xf32>
    %c0_1 = arith.constant 0 : index
    %c0_2 = arith.constant 0 : index
    %c0_3 = arith.constant 0 : index
    %1 = vector.load %arg2[%c0_1, %c0_2, %c0_3] : memref<1x4x256xf32, #tpu.memory_space<vmem>>, vector<1x4x256xf32>
    %2 = vector.shape_cast %1 : vector<1x4x256xf32> to vector<4x256xf32>
    %cst = arith.constant dense<0.000000e+00> : vector<1x256xf32>
    %3 = tpu.matmul %0, %2, %cst {dimension_numbers = #tpu.dot_dimension_numbers<[1], [0], [0], [1], [0, 0, 1, 1], [], []>} : vector<1x4xf32>, vector<4x256xf32>, vector<1x256xf32> -> vector<1x256xf32>
    %c0_4 = arith.constant 0 : index
    %c0_5 = arith.constant 0 : index
    %c0_6 = arith.constant 0 : index
    %4 = vector.load %arg4[%c0_4, %c0_5, %c0_6] : memref<1x1x256xf32, #tpu.memory_space<vmem>>, vector<1x1x256xf32>
    %5 = vector.shape_cast %4 : vector<1x1x256xf32> to vector<1x256xf32>
    %6 = vector.shape_cast %3 : vector<1x256xf32> to vector<1x1x256xf32>
    tpu.vector_store %arg4[%c0_4, %c0_5, %c0_6], %6 {strides = array<i32>} : memref<1x1x256xf32, #tpu.memory_space<vmem>>, vector<1x1x256xf32>,
    return
  }
  func.func @transform_0(%arg0: i32, %arg1: i32) -> (i32, i32, i32) {
    %c0_i32 = arith.constant 0 : i32
    %c0_i32_0 = arith.constant 0 : i32
    return %arg0, %c0_i32, %arg1 : i32, i32, i32
  }
  func.func @transform_1(%arg0: i32, %arg1: i32) -> (i32, i32) {
    %c0_i32 = arith.constant 0 : i32
    %c0_i32_0 = arith.constant 0 : i32
    %c0_i32_1 = arith.constant 0 : i32
    return %c0_i32, %c0_i32_0 : i32, i32
  }
  func.func @transform_2(%arg0: i32, %arg1: i32) -> (i32, i32, i32) {
    %c0_i32 = arith.constant 0 : i32
    %c0_i32_0 = arith.constant 0 : i32
    return %arg0, %c0_i32, %arg1 : i32, i32, i32
  }
}

</mosaic_0001>

<bundles_post_ra>
// kernel: conv1x1_forward.1
= control target key start
LH: loop header
LB: loop body
LE: loop exit
PB: predicated region body
PF: predicated region fallthrough
CT: control target
= control target key end

     0   :  { %s451_s9 = smov 0   ;;  %s453_s10 = smov 0   ;;  %s487_s0 = inlined_call_operand.vmem [shape: f32[2,4,256], index: 0, kind: input, shape index: {}]   ;;  %s488_s1 = inlined_call_operand.vmem [shape: f32[1,4], index: 1, kind: input, shape index: {}]   ;;  %s489_s2 = inlined_call_operand.vmem [shape: f32[2,1,256], index: 2, kind: output, shape index: {}]  }
   0x1   :  { %s455_s11 = smov 0  }
   0x2 LB: > { %s24_s12 = sadd.s32 1, %s428_s10  ;;  %p373_p0 = scmp.ge.s32.totalorder %s432_s11, 1  ;;  %s432_s11 = sphi %s455_s11, %s12_s11   ;;  %s428_s10 = sphi %s453_s10, %s491_s10   ;;  %s424_s9 = sphi %s451_s9, %s490_s9  }
   0x3   : > { %p26_p1 = scmp.ge.s32.totalorder %s24_s12, 2  ;;  %p133_p2 = scmp.lt.s32.totalorder %s432_s11, 3 }
   0x5   : > { %s493_s12 = smov (%p26_p1, %s24_s12), 0  ;;  %p134_p3 = pnand %p373_p0, %p133_p2 }
   0x6   : > { %p163_p4 = scmp.lt.s32.totalorder (!%p134_p3), %s424_s9, 1  ;;  %v434_v0 = vmov (!%p134_p3), 0.0   ;;  %vm189_vm0 = vcmask (!%p134_p3), 1043456   ;;  %v181_v3 = vld [vmem:[%s488_s1] sm:$0x1] (!%p134_p3)  ;;  %vm185_vm1 = vcmask (!%p134_p3), 31744   ;;  %v271_v6 = vlaneseq (!%p134_p3) }
   0x7   : > { %137 = sbr.rel (%p134_p3) target bundleno = 242 (0xf2), region = 28  ;;  %258 = vmatprep.mubr.f32.mxu0 (!%p134_p3), %v434_v0  ;;  %v435_v4 = vmov (!%p134_p3), 1966171168  }
   0x8   : > { %v269_v5 = vunpack.c.l.s4 (!%p134_p3), %v435_v4  ;;  %v272_v8 = vshrl.u32 (!%p134_p3), %v271_v6, 7  ;;  %vm285_vm2 = vcmp.lt.s32.totalorder (!%p134_p3), %v271_v6, 256 }
   0xa   : > { %v270_v7 = vunpack.c.0.s8 (!%p134_p3), %v269_v5 }
   0xc   : > { %v273_v10 = vsub.s32 (!%p134_p3), %v270_v7, %v272_v8 }
   0xe   : > { %s495_s9 = smov (!%p163_p4, %s424_s9), 1 }
   0xf   : > { %s382_s13 = sshll.u32 %s495_s9, 3  ;;  %s376_s19 = sshll.u32 %s495_s9, 1 }
  0x10   : > { %s170_s16 = scalar_lea.vmem %s487_s0, %s382_s13  ;;  %s179_s22 = scalar_lea.vmem %s489_s2, %s376_s19 }
  0x11   : > { %v182_v1 = vld [vmem:[%s170_s16] sm:$0xff] }
  0x12   : > { %v184_v2 = vcombine.high %v182_v1, %v182_v1 }
  0x14   : > { %377 = vmatprep.subr.msk.mxu0 %vm189_vm0, %v184_v2 }
  0x15   : > { %378 = vmatpush1.msk.msra.mxu0 %vm189_vm0, %v182_v1 }
  0x16   : > { %379 = vmatmul.mubr.msk.f32.vlgmr.msra.gmra.mrb[0].mxu0 %vm185_vm1, %v181_v3 }
  0xe9   : > { %v260_v9 = vpop.f32.mrb[0].mxu0 }
  0xea   : > { %v262_v11 = vpop.f32.mrb[1].mxu0 }
  0xeb   : > { %v267_v12 = vcombine.low %v260_v9, %v262_v11 }
  0xed   : > { %v274_v13 = vrot.slane %v267_v12, %v273_v10 }
  0xef   : > { %v281_v14 = vrot.slane %v274_v13, %v273_v10 }
  0xf1   : > { %287 = vst.msk [vmem:[%s179_s22] sm:$0x3] %vm285_vm2, %v281_v14 }
  0xf2 PF: > { %s12_s11 = sadd.s32 1, %s432_s11   ;;  %s490_s9 = smov %s428_s10 }
  0xf3   : > { %p9_p5 = scmp.ge.s32.totalorder %s12_s11, 4   ;;  %s491_s10 = smov %s493_s12 }
  0xf5   :  { %11 = sbr.rel (!%p9_p5) target bundleno = 2 (0x2), region = 58 }

</bundles_post_ra>
